<compile_context>
chip_gen: v7x
topology: tpu7x:2x2x1
jax: 0.10.0
libtpu: 0.0.40
codegen_flags: <defaults>
</compile_context>

<pallas_src>
import jax
import jax.numpy as jnp
from jax.experimental import pallas as pl
from jax.experimental.pallas import tpu as pltpu


# ---------------------------------------------------------------------------
# Pallas kernels
# ---------------------------------------------------------------------------

def _conv_bn_relu_pool_kernel(p_ref, w_ref, b_ref, o_ref):
    """Fused conv (im2col matmul) + folded-BN bias + ReLU + 2x2 maxpool.

    p: (4, K, TM)  -- the 4 pool taps of the transposed patch matrix (bf16)
    w: (Cout, K)   -- BN-folded conv weights (bf16, resident)
    b: (Cout, 1)   -- BN-folded bias (f32, resident)
    o: (Cout, TM)  -- lane-dense pooled output (bf16)

    max_t(relu(x_t + b)) == relu(max_t(x_t) + b)  (ReLU monotone, bias shared),
    so the 4-tap max is taken on the raw matmul results.
    """
    w = w_ref[...]
    acc = jnp.dot(w, p_ref[0], preferred_element_type=jnp.float32)
    for t in range(1, 4):
        acc = jnp.maximum(
            acc, jnp.dot(w, p_ref[t], preferred_element_type=jnp.float32))
    o_ref[...] = jnp.maximum(acc + b_ref[...], 0.0).astype(o_ref.dtype)


def _mlp_softmax_kernel(x_ref, w0_ref, b0_ref, w1_ref, b1_ref, w2_ref, b2_ref,
                        o_ref):
    """fc(400->120) -> ReLU -> fc1(120->84) -> ReLU -> fc2(84->C) -> softmax."""
    h = jnp.dot(x_ref[...], w0_ref[...], preferred_element_type=jnp.float32)
    h = jnp.maximum(h + b0_ref[...], 0.0)
    h = jnp.dot(h.astype(jnp.bfloat16), w1_ref[...],
                preferred_element_type=jnp.float32)
    h = jnp.maximum(h + b1_ref[...], 0.0)
    logits = jnp.dot(h.astype(jnp.bfloat16), w2_ref[...],
                     preferred_element_type=jnp.float32)
    logits = logits + b2_ref[...]
    m = jnp.max(logits, axis=-1, keepdims=True)
    e = jnp.exp(logits - m)
    inv = pl.reciprocal(jnp.sum(e, axis=-1, keepdims=True), approx=True)
    o_ref[...] = e * inv


# ---------------------------------------------------------------------------
# pallas_call wrappers
# ---------------------------------------------------------------------------

def _round_up(x, m):
    return ((x + m - 1) // m) * m


def _choose_tile(m, unit, max_tile):
    """Pad m to a multiple of `unit`, pick the largest tile <= max_tile dividing it."""
    m_pad = _round_up(m, unit)
    tile = min(max_tile, m_pad)
    while m_pad % tile:
        tile -= unit
    return m_pad, tile


def _pool_patches(a, k):
    """NHWC (N,H,W,C) -> (4, K, M): pool-tap-major, K=(kh,kw,c), M=N*PH*PW."""
    n, h, w, c = a.shape
    oh, ow = h - k + 1, w - k + 1
    ph, pw = oh // 2, ow // 2
    taps = [a[:, kh:kh + oh, kw:kw + ow, :]
            for kh in range(k) for kw in range(k)]
    p = jnp.stack(taps, axis=3)                       # (N, OH, OW, k*k, C)
    p = p.reshape(n, oh, ow, k * k * c)               # cols ordered (kh, kw, c)
    p = p.reshape(n, ph, 2, pw, 2, k * k * c)
    p = jnp.transpose(p, (2, 4, 5, 0, 1, 3))          # (2, 2, K, N, PH, PW)
    p = p.reshape(4, k * k * c, n * ph * pw)
    return p, (n, ph, pw)


def conv_bn_relu_pool(a_nhwc, w_mat, b_col, k=5):
    """Fused Conv(k) + folded BN + ReLU + MaxPool(2,2); returns (Cout, N, PH, PW)."""
    p, (n, ph, pw) = _pool_patches(a_nhwc, k)
    cout, kk = w_mat.shape
    m = p.shape[-1]
    m_pad, tm = _choose_tile(m, 128, 512)
    p = jnp.pad(p, ((0, 0), (0, 0), (0, m_pad - m))).astype(jnp.bfloat16)

    out = pl.pallas_call(
        _conv_bn_relu_pool_kernel,
        out_shape=jax.ShapeDtypeStruct((cout, m_pad), jnp.bfloat16),
        grid=(m_pad // tm,),
        in_specs=[
            pl.BlockSpec((4, kk, tm), lambda i: (0, 0, i)),   # patches, tiled over M
            pl.BlockSpec((cout, kk), lambda i: (0, 0)),       # weights, resident
            pl.BlockSpec((cout, 1), lambda i: (0, 0)),        # bias, resident
        ],
        out_specs=pl.BlockSpec((cout, tm), lambda i: (0, i)),
        compiler_params=pltpu.CompilerParams(
            dimension_semantics=("parallel",)),
    )(p, w_mat, b_col)

    out = out[:, :m]                                  # drop M padding
    return out.reshape(cout, n, ph, pw), (n, ph, pw)


def mlp_head(x, w0, b0, w1, b1, w2, b2):
    n, f = x.shape
    c = w2.shape[1]
    n_pad, tb = _choose_tile(n, 8, 256)
    x = jnp.pad(x, ((0, n_pad - n), (0, 0)))

    out = pl.pallas_call(
        _mlp_softmax_kernel,
        out_shape=jax.ShapeDtypeStruct((n_pad, c), jnp.float32),
        grid=(n_pad // tb,),
        in_specs=[
            pl.BlockSpec((tb, f), lambda i: (i, 0)),          # activations, tiled
            pl.BlockSpec(w0.shape, lambda i: (0, 0)),         # weights resident
            pl.BlockSpec(b0.shape, lambda i: (0, 0)),
            pl.BlockSpec(w1.shape, lambda i: (0, 0)),
            pl.BlockSpec(b1.shape, lambda i: (0, 0)),
            pl.BlockSpec(w2.shape, lambda i: (0, 0)),
            pl.BlockSpec(b2.shape, lambda i: (0, 0)),
        ],
        out_specs=pl.BlockSpec((tb, c), lambda i: (i, 0)),
        compiler_params=pltpu.CompilerParams(
            dimension_semantics=("parallel",)),
    )(x, w0, b0, w1, b1, w2, b2)
    return out[:n]


# ---------------------------------------------------------------------------
# Parameters: PyTorch-layout init + one-time preparation (BN fold, transpose, bf16)
# ---------------------------------------------------------------------------

def init_params(key, num_classes):
    ks = jax.random.split(key, 18)

    def rnd(k, shape, scale=0.1):
        return (scale * jax.random.normal(k, shape)).astype(jnp.float32)

    return {
        # layer1: Conv2d(1, 6, 5) + BatchNorm2d(6)
        "conv1_w": rnd(ks[0], (6, 1, 5, 5)),
        "conv1_b": rnd(ks[1], (6,)),
        "bn1_g": 1.0 + rnd(ks[2], (6,)),
        "bn1_b": rnd(ks[3], (6,)),
        "bn1_mean": rnd(ks[4], (6,)),
        "bn1_var": 1.0 + jnp.abs(rnd(ks[5], (6,))),
        # layer2: Conv2d(6, 16, 5) + BatchNorm2d(16)
        "conv2_w": rnd(ks[6], (16, 6, 5, 5)),
        "conv2_b": rnd(ks[7], (16,)),
        "bn2_g": 1.0 + rnd(ks[8], (16,)),
        "bn2_b": rnd(ks[9], (16,)),
        "bn2_mean": rnd(ks[10], (16,)),
        "bn2_var": 1.0 + jnp.abs(rnd(ks[11], (16,))),
        # FC head (PyTorch Linear convention: weight is (out, in))
        "fc_w": rnd(ks[12], (120, 400)),
        "fc_b": rnd(ks[13], (120,)),
        "fc1_w": rnd(ks[14], (84, 120)),
        "fc1_b": rnd(ks[15], (84,)),
        "fc2_w": rnd(ks[16], (num_classes, 84)),
        "fc2_b": rnd(ks[17], (84,))[:num_classes] if num_classes <= 84
                 else rnd(ks[17], (num_classes,)),
    }


def _fold_bn(w, b, g, beta, mu, var, eps=1e-5):
    s = g * jax.lax.rsqrt(var + eps)                  # (Cout,)
    return w * s[:, None, None, None], (b - mu) * s + beta


def _conv_mat(w):
    """(Cout, Cin, K, K) -> (Cout, K*K*Cin), columns ordered (kh, kw, cin)."""
    co, ci, kh, kw = w.shape
    return jnp.transpose(w, (0, 2, 3, 1)).reshape(co, kh * kw * ci)


def prepare_params(params):
    """One-time: fold eval-mode BN into convs, pre-transpose FC weights, cast bf16."""
    c1w, c1b = _fold_bn(params["conv1_w"], params["conv1_b"], params["bn1_g"],
                        params["bn1_b"], params["bn1_mean"], params["bn1_var"])
    c2w, c2b = _fold_bn(params["conv2_w"], params["conv2_b"], params["bn2_g"],
                        params["bn2_b"], params["bn2_mean"], params["bn2_var"])
    row = lambda v: v.reshape(1, -1).astype(jnp.float32)
    col = lambda v: v.reshape(-1, 1).astype(jnp.float32)
    return {
        "c1_w": _conv_mat(c1w).astype(jnp.bfloat16), "c1_b": col(c1b),
        "c2_w": _conv_mat(c2w).astype(jnp.bfloat16), "c2_b": col(c2b),
        "fc_w": params["fc_w"].T.astype(jnp.bfloat16), "fc_b": row(params["fc_b"]),
        "fc1_w": params["fc1_w"].T.astype(jnp.bfloat16), "fc1_b": row(params["fc1_b"]),
        "fc2_w": params["fc2_w"].T.astype(jnp.bfloat16), "fc2_b": row(params["fc2_b"]),
    }


# ---------------------------------------------------------------------------
# Full forward
# ---------------------------------------------------------------------------

def lenet5_forward(x_nchw, prep):
    # NCHW -> NHWC for patch extraction
    x = jnp.transpose(x_nchw, (0, 2, 3, 1))

    # layer1: Conv(1->6, k5) + BN + ReLU + MaxPool(2,2)   -> (6, N, 14, 14)
    y1, _ = conv_bn_relu_pool(x, prep["c1_w"], prep["c1_b"])
    x2 = jnp.transpose(y1, (1, 2, 3, 0))                  # NHWC (N, 14, 14, 6)

    # layer2: Conv(6->16, k5) + BN + ReLU + MaxPool(2,2)  -> (16, N, 5, 5)
    y2, (n, ph, pw) = conv_bn_relu_pool(x2, prep["c2_w"], prep["c2_b"])

    # flatten exactly like PyTorch NCHW: (N, 16*5*5) with (c, h, w) ordering
    flat = jnp.transpose(y2, (1, 0, 2, 3)).reshape(n, -1)

    # fc -> relu -> fc1 -> relu -> fc2 -> softmax, fused in one Pallas kernel
    return mlp_head(flat,
                    prep["fc_w"], prep["fc_b"],
                    prep["fc1_w"], prep["fc1_b"],
                    prep["fc2_w"], prep["fc2_b"])


if __name__ == "__main__":
    num_classes = 10
    batch = 4
    key = jax.random.PRNGKey(0)
    k_x, k_p = jax.random.split(key)

    # LeNet5 expects 32x32 single-channel input (400 = 16*5*5 after layer2)
    x = jax.random.normal(k_x, (batch, 1, 32, 32), jnp.float32)   # NCHW
    params = init_params(k_p, num_classes)
    prep = prepare_params(params)          # one-time BN fold / transpose / bf16

    fwd = jax.jit(lenet5_forward)
    out = jax.block_until_ready(fwd(x, prep))

    assert out.shape == (batch, num_classes)
    assert bool(jnp.all(jnp.isfinite(out)))
    # approx reciprocal in the softmax -> row sums are ~1 to within ~1e-3
    assert bool(jnp.all(jnp.abs(jnp.sum(out, axis=1) - 1.0) < 2e-2))
    print("KERNEL_OK")
</pallas_src>

<mosaic_0001>
module attributes {stable_mosaic.version = 11 : i64} {
  func.func @_conv_bn_relu_pool_kernel(%arg0: i32, %arg1: memref<4x25x128xbf16, #tpu.memory_space<vmem>>, %arg2: memref<6x25xbf16, #tpu.memory_space<vmem>>, %arg3: memref<6x1xf32, #tpu.memory_space<vmem>>, %arg4: memref<6x128xbf16, #tpu.memory_space<vmem>>) attributes {dimension_semantics = [#tpu.dimension_semantics<parallel>], iteration_bounds = array<i64: 7>, scalar_prefetch = 0 : i64, scratch_operands = 0 : i64, tpu.core_type = #tpu.core_type<tc>, window_params = [{transform_indices = @transform_0, window_bounds = array<i64: 4, 25, 128>}, {pipeline_mode = #tpu.pipeline_mode<synchronous>, transform_indices = @transform_1, window_bounds = array<i64: 6, 25>}, {pipeline_mode = #tpu.pipeline_mode<synchronous>, transform_indices = @transform_2, window_bounds = array<i64: 6, 1>}, {transform_indices = @transform_3, window_bounds = array<i64: 6, 128>}]} {
    %c0 = arith.constant 0 : index
    %c0_0 = arith.constant 0 : index
    %0 = vector.load %arg2[%c0, %c0_0] : memref<6x25xbf16, #tpu.memory_space<vmem>>, vector<6x25xbf16>
    %c0_1 = arith.constant 0 : index
    %c0_2 = arith.constant 0 : index
    %c0_3 = arith.constant 0 : index
    %1 = vector.load %arg1[%c0_1, %c0_2, %c0_3] : memref<4x25x128xbf16, #tpu.memory_space<vmem>>, vector<1x25x128xbf16>
    %2 = vector.shape_cast %1 : vector<1x25x128xbf16> to vector<25x128xbf16>
    %cst = arith.constant dense<0.000000e+00> : vector<6x128xf32>
    %3 = tpu.matmul %0, %2, %cst {dimension_numbers = #tpu.dot_dimension_numbers<[1], [0], [0], [1], [0, 0, 1, 1], [], []>} : vector<6x25xbf16>, vector<25x128xbf16>, vector<6x128xf32> -> vector<6x128xf32>
    %c1 = arith.constant 1 : index
    %c0_4 = arith.constant 0 : index
    %c0_5 = arith.constant 0 : index
    %4 = vector.load %arg1[%c1, %c0_4, %c0_5] : memref<4x25x128xbf16, #tpu.memory_space<vmem>>, vector<1x25x128xbf16>
    %5 = vector.shape_cast %4 : vector<1x25x128xbf16> to vector<25x128xbf16>
    %cst_6 = arith.constant dense<0.000000e+00> : vector<6x128xf32>
    %6 = tpu.matmul %0, %5, %cst_6 {dimension_numbers = #tpu.dot_dimension_numbers<[1], [0], [0], [1], [0, 0, 1, 1], [], []>} : vector<6x25xbf16>, vector<25x128xbf16>, vector<6x128xf32> -> vector<6x128xf32>
    %7 = arith.maximumf %3, %6 : vector<6x128xf32>
    %c2 = arith.constant 2 : index
    %c0_7 = arith.constant 0 : index
    %c0_8 = arith.constant 0 : index
    %8 = vector.load %arg1[%c2, %c0_7, %c0_8] : memref<4x25x128xbf16, #tpu.memory_space<vmem>>, vector<1x25x128xbf16>
    %9 = vector.shape_cast %8 : vector<1x25x128xbf16> to vector<25x128xbf16>
    %cst_9 = arith.constant dense<0.000000e+00> : vector<6x128xf32>
    %10 = tpu.matmul %0, %9, %cst_9 {dimension_numbers = #tpu.dot_dimension_numbers<[1], [0], [0], [1], [0, 0, 1, 1], [], []>} : vector<6x25xbf16>, vector<25x128xbf16>, vector<6x128xf32> -> vector<6x128xf32>
    %11 = arith.maximumf %7, %10 : vector<6x128xf32>
    %c3 = arith.constant 3 : index
    %c0_10 = arith.constant 0 : index
    %c0_11 = arith.constant 0 : index
    %12 = vector.load %arg1[%c3, %c0_10, %c0_11] : memref<4x25x128xbf16, #tpu.memory_space<vmem>>, vector<1x25x128xbf16>
    %13 = vector.shape_cast %12 : vector<1x25x128xbf16> to vector<25x128xbf16>
    %cst_12 = arith.constant dense<0.000000e+00> : vector<6x128xf32>
    %14 = tpu.matmul %0, %13, %cst_12 {dimension_numbers = #tpu.dot_dimension_numbers<[1], [0], [0], [1], [0, 0, 1, 1], [], []>} : vector<6x25xbf16>, vector<25x128xbf16>, vector<6x128xf32> -> vector<6x128xf32>
    %15 = arith.maximumf %11, %14 : vector<6x128xf32>
    %c0_13 = arith.constant 0 : index
    %c0_14 = arith.constant 0 : index
    %16 = vector.load %arg3[%c0_13, %c0_14] : memref<6x1xf32, #tpu.memory_space<vmem>>, vector<6x1xf32>
    %17 = vector.broadcast %16 : vector<6x1xf32> to vector<6x128xf32>
    %18 = arith.addf %15, %17 : vector<6x128xf32>
    %cst_15 = arith.constant 0.000000e+00 : f32
    %19 = vector.broadcast %cst_15 : f32 to vector<6x128xf32>
    %20 = arith.maximumf %18, %19 : vector<6x128xf32>
    %21 = arith.truncf %20 : vector<6x128xf32> to vector<6x128xbf16>
    %c0_16 = arith.constant 0 : index
    %c0_17 = arith.constant 0 : index
    %22 = vector.load %arg4[%c0_16, %c0_17] : memref<6x128xbf16, #tpu.memory_space<vmem>>, vector<6x128xbf16>
    tpu.vector_store %arg4[%c0_16, %c0_17], %21 {strides = array<i32>} : memref<6x128xbf16, #tpu.memory_space<vmem>>, vector<6x128xbf16>,
    return
  }
  func.func @transform_0(%arg0: i32) -> (i32, i32, i32) {
    %c0_i32 = arith.constant 0 : i32
    %c0_i32_0 = arith.constant 0 : i32
    %c0_i32_1 = arith.constant 0 : i32
    return %c0_i32, %c0_i32_0, %arg0 : i32, i32, i32
  }
  func.func @transform_1(%arg0: i32) -> (i32, i32) {
    %c0_i32 = arith.constant 0 : i32
    %c0_i32_0 = arith.constant 0 : i32
    %c0_i32_1 = arith.constant 0 : i32
    return %c0_i32, %c0_i32_0 : i32, i32
  }
  func.func @transform_2(%arg0: i32) -> (i32, i32) {
    %c0_i32 = arith.constant 0 : i32
    %c0_i32_0 = arith.constant 0 : i32
    %c0_i32_1 = arith.constant 0 : i32
    return %c0_i32, %c0_i32_0 : i32, i32
  }
  func.func @transform_3(%arg0: i32) -> (i32, i32) {
    %c0_i32 = arith.constant 0 : i32
    %c0_i32_0 = arith.constant 0 : i32
    return %c0_i32, %arg0 : i32, i32
  }
}

module attributes {stable_mosaic.version = 11 : i64} {
  func.func @_conv_bn_relu_pool_kernel(%arg0: i32, %arg1: memref<4x150x128xbf16, #tpu.memory_space<vmem>>, %arg2: memref<16x150xbf16, #tpu.memory_space<vmem>>, %arg3: memref<16x1xf32, #tpu.memory_space<vmem>>, %arg4: memref<16x128xbf16, #tpu.memory_space<vmem>>) attributes {dimension_semantics = [#tpu.dimension_semantics<parallel>], iteration_bounds = array<i64: 1>, scalar_prefetch = 0 : i64, scratch_operands = 0 : i64, tpu.core_type = #tpu.core_type<tc>, window_params = [{transform_indices = @transform_0, window_bounds = array<i64: 4, 150, 128>}, {pipeline_mode = #tpu.pipeline_mode<synchronous>, transform_indices = @transform_1, window_bounds = array<i64: 16, 150>}, {pipeline_mode = #tpu.pipeline_mode<synchronous>, transform_indices = @transform_2, window_bounds = array<i64: 16, 1>}, {transform_indices = @transform_3, window_bounds = array<i64: 16, 128>}]} {
    %c0 = arith.constant 0 : index
    %c0_0 = arith.constant 0 : index
    %0 = vector.load %arg2[%c0, %c0_0] : memref<16x150xbf16, #tpu.memory_space<vmem>>, vector<16x150xbf16>
    %c0_1 = arith.constant 0 : index
    %c0_2 = arith.constant 0 : index
    %c0_3 = arith.constant 0 : index
    %1 = vector.load %arg1[%c0_1, %c0_2, %c0_3] : memref<4x150x128xbf16, #tpu.memory_space<vmem>>, vector<1x150x128xbf16>
    %2 = vector.shape_cast %1 : vector<1x150x128xbf16> to vector<150x128xbf16>
    %cst = arith.constant dense<0.000000e+00> : vector<16x128xf32>
    %3 = tpu.matmul %0, %2, %cst {dimension_numbers = #tpu.dot_dimension_numbers<[1], [0], [0], [1], [0, 0, 1, 1], [], []>} : vector<16x150xbf16>, vector<150x128xbf16>, vector<16x128xf32> -> vector<16x128xf32>
    %c1 = arith.constant 1 : index
    %c0_4 = arith.constant 0 : index
    %c0_5 = arith.constant 0 : index
    %4 = vector.load %arg1[%c1, %c0_4, %c0_5] : memref<4x150x128xbf16, #tpu.memory_space<vmem>>, vector<1x150x128xbf16>
    %5 = vector.shape_cast %4 : vector<1x150x128xbf16> to vector<150x128xbf16>
    %cst_6 = arith.constant dense<0.000000e+00> : vector<16x128xf32>
    %6 = tpu.matmul %0, %5, %cst_6 {dimension_numbers = #tpu.dot_dimension_numbers<[1], [0], [0], [1], [0, 0, 1, 1], [], []>} : vector<16x150xbf16>, vector<150x128xbf16>, vector<16x128xf32> -> vector<16x128xf32>
    %7 = arith.maximumf %3, %6 : vector<16x128xf32>
    %c2 = arith.constant 2 : index
    %c0_7 = arith.constant 0 : index
    %c0_8 = arith.constant 0 : index
    %8 = vector.load %arg1[%c2, %c0_7, %c0_8] : memref<4x150x128xbf16, #tpu.memory_space<vmem>>, vector<1x150x128xbf16>
    %9 = vector.shape_cast %8 : vector<1x150x128xbf16> to vector<150x128xbf16>
    %cst_9 = arith.constant dense<0.000000e+00> : vector<16x128xf32>
    %10 = tpu.matmul %0, %9, %cst_9 {dimension_numbers = #tpu.dot_dimension_numbers<[1], [0], [0], [1], [0, 0, 1, 1], [], []>} : vector<16x150xbf16>, vector<150x128xbf16>, vector<16x128xf32> -> vector<16x128xf32>
    %11 = arith.maximumf %7, %10 : vector<16x128xf32>
    %c3 = arith.constant 3 : index
    %c0_10 = arith.constant 0 : index
    %c0_11 = arith.constant 0 : index
    %12 = vector.load %arg1[%c3, %c0_10, %c0_11] : memref<4x150x128xbf16, #tpu.memory_space<vmem>>, vector<1x150x128xbf16>
    %13 = vector.shape_cast %12 : vector<1x150x128xbf16> to vector<150x128xbf16>
    %cst_12 = arith.constant dense<0.000000e+00> : vector<16x128xf32>
    %14 = tpu.matmul %0, %13, %cst_12 {dimension_numbers = #tpu.dot_dimension_numbers<[1], [0], [0], [1], [0, 0, 1, 1], [], []>} : vector<16x150xbf16>, vector<150x128xbf16>, vector<16x128xf32> -> vector<16x128xf32>
    %15 = arith.maximumf %11, %14 : vector<16x128xf32>
    %c0_13 = arith.constant 0 : index
    %c0_14 = arith.constant 0 : index
    %16 = vector.load %arg3[%c0_13, %c0_14] : memref<16x1xf32, #tpu.memory_space<vmem>>, vector<16x1xf32>
    %17 = vector.broadcast %16 : vector<16x1xf32> to vector<16x128xf32>
    %18 = arith.addf %15, %17 : vector<16x128xf32>
    %cst_15 = arith.constant 0.000000e+00 : f32
    %19 = vector.broadcast %cst_15 : f32 to vector<16x128xf32>
    %20 = arith.maximumf %18, %19 : vector<16x128xf32>
    %21 = arith.truncf %20 : vector<16x128xf32> to vector<16x128xbf16>
    %c0_16 = arith.constant 0 : index
    %c0_17 = arith.constant 0 : index
    %22 = vector.load %arg4[%c0_16, %c0_17] : memref<16x128xbf16, #tpu.memory_space<vmem>>, vector<16x128xbf16>
    tpu.vector_store %arg4[%c0_16, %c0_17], %21 {strides = array<i32>} : memref<16x128xbf16, #tpu.memory_space<vmem>>, vector<16x128xbf16>,
    return
  }
  func.func @transform_0(%arg0: i32) -> (i32, i32, i32) {
    %c0_i32 = arith.constant 0 : i32
    %c0_i32_0 = arith.constant 0 : i32
    %c0_i32_1 = arith.constant 0 : i32
    return %c0_i32, %c0_i32_0, %arg0 : i32, i32, i32
  }
  func.func @transform_1(%arg0: i32) -> (i32, i32) {
    %c0_i32 = arith.constant 0 : i32
    %c0_i32_0 = arith.constant 0 : i32
    %c0_i32_1 = arith.constant 0 : i32
    return %c0_i32, %c0_i32_0 : i32, i32
  }
  func.func @transform_2(%arg0: i32) -> (i32, i32) {
    %c0_i32 = arith.constant 0 : i32
    %c0_i32_0 = arith.constant 0 : i32
    %c0_i32_1 = arith.constant 0 : i32
    return %c0_i32, %c0_i32_0 : i32, i32
  }
  func.func @transform_3(%arg0: i32) -> (i32, i32) {
    %c0_i32 = arith.constant 0 : i32
    %c0_i32_0 = arith.constant 0 : i32
    return %c0_i32, %arg0 : i32, i32
  }
}

module attributes {stable_mosaic.version = 11 : i64} {
  func.func @_mlp_softmax_kernel(%arg0: i32, %arg1: memref<8x400xbf16, #tpu.memory_space<vmem>>, %arg2: memref<400x120xbf16, #tpu.memory_space<vmem>>, %arg3: memref<1x120xf32, #tpu.memory_space<vmem>>, %arg4: memref<120x84xbf16, #tpu.memory_space<vmem>>, %arg5: memref<1x84xf32, #tpu.memory_space<vmem>>, %arg6: memref<84x10xbf16, #tpu.memory_space<vmem>>, %arg7: memref<1x10xf32, #tpu.memory_space<vmem>>, %arg8: memref<8x10xf32, #tpu.memory_space<vmem>>) attributes {dimension_semantics = [#tpu.dimension_semantics<parallel>], iteration_bounds = array<i64: 1>, scalar_prefetch = 0 : i64, scratch_operands = 0 : i64, tpu.core_type = #tpu.core_type<tc>, window_params = [{transform_indices = @transform_0, window_bounds = array<i64: 8, 400>}, {pipeline_mode = #tpu.pipeline_mode<synchronous>, transform_indices = @transform_1, window_bounds = array<i64: 400, 120>}, {pipeline_mode = #tpu.pipeline_mode<synchronous>, transform_indices = @transform_2, window_bounds = array<i64: 1, 120>}, {pipeline_mode = #tpu.pipeline_mode<synchronous>, transform_indices = @transform_3, window_bounds = array<i64: 120, 84>}, {pipeline_mode = #tpu.pipeline_mode<synchronous>, transform_indices = @transform_4, window_bounds = array<i64: 1, 84>}, {pipeline_mode = #tpu.pipeline_mode<synchronous>, transform_indices = @transform_5, window_bounds = array<i64: 84, 10>}, {pipeline_mode = #tpu.pipeline_mode<synchronous>, transform_indices = @transform_6, window_bounds = array<i64: 1, 10>}, {transform_indices = @transform_7, window_bounds = array<i64: 8, 10>}]} {
    %c0 = arith.constant 0 : index
    %c0_0 = arith.constant 0 : index
    %0 = vector.load %arg1[%c0, %c0_0] : memref<8x400xbf16, #tpu.memory_space<vmem>>, vector<8x400xbf16>
    %c0_1 = arith.constant 0 : index
    %c0_2 = arith.constant 0 : index
    %1 = vector.load %arg2[%c0_1, %c0_2] : memref<400x120xbf16, #tpu.memory_space<vmem>>, vector<400x120xbf16>
    %cst = arith.constant dense<0.000000e+00> : vector<8x120xf32>
    %2 = tpu.matmul %0, %1, %cst {dimension_numbers = #tpu.dot_dimension_numbers<[1], [0], [0], [1], [0, 0, 1, 1], [], []>} : vector<8x400xbf16>, vector<400x120xbf16>, vector<8x120xf32> -> vector<8x120xf32>
    %c0_3 = arith.constant 0 : index
    %c0_4 = arith.constant 0 : index
    %3 = vector.load %arg3[%c0_3, %c0_4] : memref<1x120xf32, #tpu.memory_space<vmem>>, vector<1x120xf32>
    %4 = vector.broadcast %3 : vector<1x120xf32> to vector<8x120xf32>
    %5 = arith.addf %2, %4 : vector<8x120xf32>
    %cst_5 = arith.constant 0.000000e+00 : f32
    %6 = vector.broadcast %cst_5 : f32 to vector<8x120xf32>
    %7 = arith.maximumf %5, %6 : vector<8x120xf32>
    %8 = arith.truncf %7 : vector<8x120xf32> to vector<8x120xbf16>
    %c0_6 = arith.constant 0 : index
    %c0_7 = arith.constant 0 : index
    %9 = vector.load %arg4[%c0_6, %c0_7] : memref<120x84xbf16, #tpu.memory_space<vmem>>, vector<120x84xbf16>
    %cst_8 = arith.constant dense<0.000000e+00> : vector<8x84xf32>
    %10 = tpu.matmul %8, %9, %cst_8 {dimension_numbers = #tpu.dot_dimension_numbers<[1], [0], [0], [1], [0, 0, 1, 1], [], []>} : vector<8x120xbf16>, vector<120x84xbf16>, vector<8x84xf32> -> vector<8x84xf32>
    %c0_9 = arith.constant 0 : index
    %c0_10 = arith.constant 0 : index
    %11 = vector.load %arg5[%c0_9, %c0_10] : memref<1x84xf32, #tpu.memory_space<vmem>>, vector<1x84xf32>
    %12 = vector.broadcast %11 : vector<1x84xf32> to vector<8x84xf32>
    %13 = arith.addf %10, %12 : vector<8x84xf32>
    %cst_11 = arith.constant 0.000000e+00 : f32
    %14 = vector.broadcast %cst_11 : f32 to vector<8x84xf32>
    %15 = arith.maximumf %13, %14 : vector<8x84xf32>
    %16 = arith.truncf %15 : vector<8x84xf32> to vector<8x84xbf16>
    %c0_12 = arith.constant 0 : index
    %c0_13 = arith.constant 0 : index
    %17 = vector.load %arg6[%c0_12, %c0_13] : memref<84x10xbf16, #tpu.memory_space<vmem>>, vector<84x10xbf16>
    %cst_14 = arith.constant dense<0.000000e+00> : vector<8x10xf32>
    %18 = tpu.matmul %16, %17, %cst_14 {dimension_numbers = #tpu.dot_dimension_numbers<[1], [0], [0], [1], [0, 0, 1, 1], [], []>} : vector<8x84xbf16>, vector<84x10xbf16>, vector<8x10xf32> -> vector<8x10xf32>
    %c0_15 = arith.constant 0 : index
    %c0_16 = arith.constant 0 : index
    %19 = vector.load %arg7[%c0_15, %c0_16] : memref<1x10xf32, #tpu.memory_space<vmem>>, vector<1x10xf32>
    %20 = vector.broadcast %19 : vector<1x10xf32> to vector<8x10xf32>
    %21 = arith.addf %18, %20 : vector<8x10xf32>
    %cst_17 = arith.constant dense<0xFF800000> : vector<8xf32>
    %22 = vector.multi_reduction <maximumf>, %21, %cst_17 [1] : vector<8x10xf32> to vector<8xf32>
    %23 = vector.shape_cast %22 : vector<8xf32> to vector<8x1xf32>
    %24 = vector.broadcast %23 : vector<8x1xf32> to vector<8x10xf32>
    %25 = arith.subf %21, %24 : vector<8x10xf32>
    %26 = math.exp %25 : vector<8x10xf32>
    %cst_18 = arith.constant dense<0.000000e+00> : vector<8xf32>
    %27 = vector.multi_reduction <add>, %26, %cst_18 [1] : vector<8x10xf32> to vector<8xf32>
    %28 = vector.shape_cast %27 : vector<8xf32> to vector<8x1xf32>
    %29 = tpu.reciprocal %28 {approx = true} : vector<8x1xf32> -> vector<8x1xf32>
    %30 = vector.broadcast %29 : vector<8x1xf32> to vector<8x10xf32>
    %31 = arith.mulf %26, %30 : vector<8x10xf32>
    %c0_19 = arith.constant 0 : index
    %c0_20 = arith.constant 0 : index
    %32 = vector.load %arg8[%c0_19, %c0_20] : memref<8x10xf32, #tpu.memory_space<vmem>>, vector<8x10xf32>
    tpu.vector_store %arg8[%c0_19, %c0_20], %31 {strides = array<i32>} : memref<8x10xf32, #tpu.memory_space<vmem>>, vector<8x10xf32>,
    return
  }
  func.func @transform_0(%arg0: i32) -> (i32, i32) {
    %c0_i32 = arith.constant 0 : i32
    %c0_i32_0 = arith.constant 0 : i32
    return %arg0, %c0_i32 : i32, i32
  }
  func.func @transform_1(%arg0: i32) -> (i32, i32) {
    %c0_i32 = arith.constant 0 : i32
    %c0_i32_0 = arith.constant 0 : i32
    %c0_i32_1 = arith.constant 0 : i32
    return %c0_i32, %c0_i32_0 : i32, i32
  }
  func.func @transform_2(%arg0: i32) -> (i32, i32) {
    %c0_i32 = arith.constant 0 : i32
    %c0_i32_0 = arith.constant 0 : i32
    %c0_i32_1 = arith.constant 0 : i32
    return %c0_i32, %c0_i32_0 : i32, i32
  }
  func.func @transform_3(%arg0: i32) -> (i32, i32) {
    %c0_i32 = arith.constant 0 : i32
    %c0_i32_0 = arith.constant 0 : i32
    %c0_i32_1 = arith.constant 0 : i32
    return %c0_i32, %c0_i32_0 : i32, i32
  }
  func.func @transform_4(%arg0: i32) -> (i32, i32) {
    %c0_i32 = arith.constant 0 : i32
    %c0_i32_0 = arith.constant 0 : i32
    %c0_i32_1 = arith.constant 0 : i32
    return %c0_i32, %c0_i32_0 : i32, i32
  }
  func.func @transform_5(%arg0: i32) -> (i32, i32) {
    %c0_i32 = arith.constant 0 : i32
    %c0_i32_0 = arith.constant 0 : i32
    %c0_i32_1 = arith.constant 0 : i32
    return %c0_i32, %c0_i32_0 : i32, i32
  }
  func.func @transform_6(%arg0: i32) -> (i32, i32) {
    %c0_i32 = arith.constant 0 : i32
    %c0_i32_0 = arith.constant 0 : i32
    %c0_i32_1 = arith.constant 0 : i32
    return %c0_i32, %c0_i32_0 : i32, i32
  }
  func.func @transform_7(%arg0: i32) -> (i32, i32) {
    %c0_i32 = arith.constant 0 : i32
    %c0_i32_0 = arith.constant 0 : i32
    return %arg0, %c0_i32 : i32, i32
  }
}

</mosaic_0001>

<bundles_post_ra>
// kernel: lenet5_forward.3
= control target key start
LH: loop header
LB: loop body
LE: loop exit
PB: predicated region body
PF: predicated region fallthrough
CT: control target
= control target key end

     0   :  { %s751_s12 = smov 0   ;;  %s753_s13 = smov 0   ;;  %s837_s0 = inlined_call_operand.vmem [shape: bf16[4,25,896], index: 0, kind: input, shape index: {}]   ;;  %s838_s1 = inlined_call_operand.vmem [shape: bf16[6,25], index: 1, kind: input, shape index: {}]   ;;  %s839_s2 = inlined_call_operand.vmem [shape: f32[6,1], index: 2, kind: input, shape index: {}]   ;;  %s840_s3 = inlined_call_operand.vmem [shape: bf16[6,896], index: 3, kind: output, shape index: {}]  }
   0x1   :  { %s755_s14 = smov 0  }
   0x2 LB: > { %s587_s15 = sadd.s32 4294967295, %s725_s14   ;;  %s768_s16 = sadd.s32 1, %s725_s14   ;;  %s725_s14 = sphi %s755_s14, %s843_s14   ;;  %s721_s13 = sphi %s753_s13, %s842_s13   ;;  %s717_s12 = sphi %s751_s12, %s841_s12  }
   0x3   : > { %s17_s17 = ssub.s32 %s725_s14, %s768_s16  ;;  %s20_s18 = sadd.s32 1, %s721_s13 }
   0x4   : > { %p18_p0 = scmp.eq.s32.totalorder %s17_s17, 0  ;;  %p27_p1 = scmp.ne.s32.totalorder %s721_s13, %s717_s12 }
   0x5   : > { %p28_p2 = scmp.eq.s32.totalorder %s725_s14, 0  ;;  %p590_p4 = scmp.ge.s32.totalorder %s725_s14, 7 }
   0x6   : > { %s777_s19 = scalar_select %p18_p0, %s721_s13, %s20_s18  }
   0x7   : > { %p29_p3 = por %p28_p2, %p27_p1  ;;  %127 = sbr.rel (%p590_p4) target bundleno = 28 (0x1c), region = 24 }
   0xe   : > { %130 = sbr.rel (!%p29_p3) target bundleno = 28 (0x1c), region = 28  ;;  %s132_s20 = sand.u32 (%p29_p3), 1, %s721_s13  }
   0xf   : > { %s592_s21 = sshll.u32 (%p29_p3), %s725_s14, 2  ;;  %s591_s22 = sshll.u32 (%p29_p3), %s132_s20, 6 }
  0x10   : > { %s785_s25 = scalar_lea.vmem (%p29_p3), %s837_s0, %s592_s21  ;;  %s134_s26 = scalar_lea.vmem (%p29_p3), [#allocation2], %s591_s22 }
  0x11   : > { %v152_v0 = vld [vmem:[%s785_s25] sm:$0xf] (%p29_p3)  ;;  %v154_v1 = vld [vmem:[%s785_s25 + $0x1c] sm:$0xf] (%p29_p3)  ;;  %v156_v2 = vld [vmem:[%s785_s25 + $0x38] sm:$0xf] (%p29_p3) }
  0x12   : > { %153 = vst [vmem:[%s134_s26] sm:$0xf] (%p29_p3), %v152_v0  ;;  %155 = vst [vmem:[%s134_s26 + $0x4] sm:$0xf] (%p29_p3), %v154_v1  ;;  %v158_v3 = vld [vmem:[%s785_s25 + $0x54] sm:$0xf] (%p29_p3) }
  0x13   : > { %v160_v4 = vld [vmem:[%s785_s25 + $0x70] sm:$0xf] (%p29_p3)  ;;  %157 = vst [vmem:[%s134_s26 + $0x8] sm:$0xf] (%p29_p3), %v156_v2  ;;  %159 = vst [vmem:[%s134_s26 + $0xc] sm:$0xf] (%p29_p3), %v158_v3 }
  0x14   : > { %161 = vst [vmem:[%s134_s26 + $0x10] sm:$0xf] (%p29_p3), %v160_v4  ;;  %v162_v5 = vld [vmem:[%s785_s25 + $0x8c] sm:$0xf] (%p29_p3)  ;;  %v164_v6 = vld [vmem:[%s785_s25 + $0xa8] sm:$0xf] (%p29_p3) }
  0x15   : > { %v166_v7 = vld [vmem:[%s785_s25 + $0xc4] sm:$0xf]  ;;  %163 = vst [vmem:[%s134_s26 + $0x14] sm:$0xf] %v162_v5  ;;  %165 = vst [vmem:[%s134_s26 + $0x18] sm:$0xf] %v164_v6 }
  0x16   : > { %167 = vst [vmem:[%s134_s26 + $0x1c] sm:$0xf] %v166_v7  ;;  %v168_v8 = vld [vmem:[%s785_s25 + $0xe0] sm:$0xf]  ;;  %v170_v9 = vld [vmem:[%s785_s25 + $0xfc] sm:$0xf] }
  0x17   : > { %v172_v10 = vld [vmem:[%s785_s25 + $0x118] sm:$0xf]  ;;  %169 = vst [vmem:[%s134_s26 + $0x20] sm:$0xf] %v168_v8  ;;  %171 = vst [vmem:[%s134_s26 + $0x24] sm:$0xf] %v170_v9 }
  0x18   : > { %173 = vst [vmem:[%s134_s26 + $0x28] sm:$0xf] %v172_v10  ;;  %v174_v11 = vld [vmem:[%s785_s25 + $0x134] sm:$0xf]  ;;  %v176_v12 = vld [vmem:[%s785_s25 + $0x150] sm:$0xf] }
  0x19   : > { %v178_v13 = vld [vmem:[%s785_s25 + $0x16c] sm:$0xf]  ;;  %175 = vst [vmem:[%s134_s26 + $0x2c] sm:$0xf] %v174_v11  ;;  %177 = vst [vmem:[%s134_s26 + $0x30] sm:$0xf] %v176_v12 }
  0x1a   : > { %179 = vst [vmem:[%s134_s26 + $0x34] sm:$0xf] %v178_v13  ;;  %v180_v14 = vld [vmem:[%s785_s25 + $0x188] sm:$0xf]  ;;  %v182_v15 = vld [vmem:[%s785_s25 + $0x1a4] sm:$0xf] }
  0x1b   : > { %181 = vst [vmem:[%s134_s26 + $0x38] sm:$0xf] %v180_v14  ;;  %183 = vst [vmem:[%s134_s26 + $0x3c] sm:$0xf] %v182_v15 }
  0x1c PF: > { %p593_p5 = scmp.ge.s32.totalorder %s725_s14, 1  ;;  %p237_p6 = scmp.lt.s32.totalorder %s725_s14, 8 }
  0x1e   : > { %p238_p7 = pnand %p593_p5, %p237_p6 }
  0x1f   : > { %s244_s27 = sand.u32 (!%p238_p7), 1, %s717_s12   ;;  %vm291_vm0 = vcmask (!%p238_p7), 1043456   ;;  %v727_v16 = vmov (!%p238_p7), 0.0   ;;  %vm292_vm1 = vcmask (!%p238_p7), 1044480   ;;  %v728_v17 = vmov (!%p238_p7), 65535   ;;  %p266_p8 = scmp.lt.s32.totalorder (!%p238_p7), %s587_s15, 6 }
  0x20   : > { %241 = sbr.rel (%p238_p7) target bundleno = 273 (0x111), region = 69  ;;  %634 = vmatprep.subr.bf16.mxu0 (!%p238_p7), %v727_v16  ;;  %642 = vmatprep.subr.bf16.mxu1 (!%p238_p7), %v727_v16  ;;  %s594_s28 = sshll.u32 (!%p238_p7), %s244_s27, 6  ;;  %v293_v18 = vsel (!%p238_p7), %vm291_vm0, 4294967295, %v728_v17  ;;  %vm729_vm2 = vmmov (!%p238_p7), 0   ;;  %v518_v19 = vld [vmem:[%s839_s2] sm:$0x3f] (!%p238_p7) }
  0x21   : > { %638 = vmatprep.mubr.msk.bf16.mxu0 (!%p238_p7), %vm729_vm2, %v727_v16  ;;  %646 = vmatprep.mubr.msk.bf16.mxu1 (!%p238_p7), %vm729_vm2, %v727_v16  ;;  %s246_s4 = scalar_lea.vmem (!%p238_p7), [#allocation2], %s594_s28  ;;  %v730_v21 = vmov (!%p238_p7), 0   ;;  %v294_v23 = vsel (!%p238_p7), %vm292_vm1, %v293_v18, 0  ;;  %v271_v27 = vld [vmem:[%s838_s1] sm:$0x7] (!%p238_p7)  ;;  %vm287_vm3 = vcmask (!%p238_p7), 203776  }
  0x22   : > { %v695_v20 = vld [vmem:[%s246_s4] sm:$0xff] (!%p238_p7)   ;;  %694 = vset.pattern.permute.xlu0 (!%p238_p7), %v730_v21  ;;  %v696_v22 = vld [vmem:[%s246_s4 + $0x10] sm:$0xff] (!%p238_p7)   ;;  %v697_v24 = vld [vmem:[%s246_s4 + $0x8] sm:$0x1f] (!%p238_p7)  }
  0x23   : > { %521 = vperm.xlu0 (!%p238_p7), %694, %v518_v19   ;;  %635 = vmatpush3.bf16.msra.mxu0 (!%p238_p7), %v695_v20  ;;  %v698_v25 = vld [vmem:[%s246_s4 + $0x18] sm:$0x1f] (!%p238_p7)   ;;  %v296_v26 = vand.u32 (!%p238_p7), %v697_v24, %v294_v23  ;;  %v699_v28 = vld [vmem:[%s246_s4 + $0x20] sm:$0xff] (!%p238_p7)   ;;  %v700_v30 = vld [vmem:[%s246_s4 + $0x30] sm:$0xff] (!%p238_p7)  }
  0x24   : > { %643 = vmatpush3.bf16.msra.mxu1 (!%p238_p7), %v696_v22  ;;  %636 = vmatprep.subr.bf16.mxu0 (!%p238_p7), %v727_v16  ;;  %v355_v29 = vand.u32 (!%p238_p7), %v698_v25, %v294_v23  ;;  %v701_v31 = vld [vmem:[%s246_s4 + $0x28] sm:$0x1f] (!%p238_p7)   ;;  %v702_v32 = vld [vmem:[%s246_s4 + $0x38] sm:$0x1f] (!%p238_p7)  }
  0x25   : > { %644 = vmatprep.subr.bf16.mxu1 (!%p238_p7), %v727_v16  ;;  %v415_v33 = vand.u32 (!%p238_p7), %v701_v31, %v294_v23  ;;  %v475_v34 = vand.u32 (!%p238_p7), %v702_v32, %v294_v23 }
  0x27   : > { %637 = vmatpush3.bf16.msra.mxu0 %v296_v26  ;;  %s845_s15 = smov (!%p266_p8, %s587_s15), 6 }
  0x28   : > { %645 = vmatpush3.bf16.msra.mxu1 %v355_v29  ;;  %650 = vmatprep.subr.bf16.mxu0 %v727_v16  ;;  %s595_s7 = sshll.u32 %s845_s15, 2 }
  0x29   : > { %658 = vmatprep.subr.bf16.mxu1 %v727_v16  ;;  %s269_s10 = scalar_lea.vmem %s840_s3, %s595_s7 }
  0x2a   : > { %639 = vmatmul.mubr.msk.bf16.vlgmr.msra.gmra.mrb[0].mxu0 %vm287_vm3, %v271_v27 }
  0x2b   : > { %647 = vmatmul.mubr.msk.bf16.vlgmr.msra.gmra.mrb[0].mxu1 %vm287_vm3, %v271_v27  ;;  %651 = vmatpush3.bf16.msra.mxu0 %v699_v28 }
  0x2c   : > { %659 = vmatpush3.bf16.msra.mxu1 %v700_v30  ;;  %652 = vmatprep.subr.bf16.mxu0 %v727_v16 }
  0x2d   : > { %660 = vmatprep.subr.bf16.mxu1 %v727_v16  ;;  %654 = vmatprep.mubr.msk.bf16.mxu0 %vm729_vm2, %v727_v16 }
  0x2e   : > { %662 = vmatprep.mubr.msk.bf16.mxu1 %vm729_vm2, %v727_v16 }
  0x2f   : > { %653 = vmatpush3.bf16.msra.mxu0 %v415_v33 }
  0x30   : > { %661 = vmatpush3.bf16.msra.mxu1 %v475_v34 }
  0x32   : > { %655 = vmatmul.mubr.msk.bf16.vlgmr.msra.gmra.mrb[4].mxu0 %vm287_vm3, %v271_v27 }
  0x33   : > { %663 = vmatmul.mubr.msk.bf16.vlgmr.msra.gmra.mrb[4].mxu1 %vm287_vm3, %v271_v27 }
  0xa2   : > { %v522_v45 = vpop.permute.xlu0 %521 }
  0xfd   : > { %v332_v35 = vpop.f32.mrb[0].mxu0 }
  0xfe   : > { %v391_v36 = vpop.f32.mrb[0].mxu1  ;;  %v640_v37 = vpop.f32.mrb[1].mxu0 }
  0xff   : > { %v397_v38 = vmax.f32 %v332_v35, %v391_v36  ;;  %v648_v39 = vpop.f32.mrb[1].mxu1  ;;  %v335_v40 = vpop.f32.mrb[2].mxu0 }
 0x100   : > { %v394_v41 = vpop.f32.mrb[2].mxu1  ;;  %v641_v42 = vpop.f32.mrb[3].mxu0 }
 0x101   : > { %v649_v43 = vpop.f32.mrb[3].mxu1 }
 0x105   : > { %v451_v44 = vpop.f32.mrb[4].mxu0 }
 0x106   : > { %v457_v46 = vmax.f32 %v397_v38, %v451_v44  ;;  %v511_v47 = vpop.f32.mrb[4].mxu1  ;;  %v656_v48 = vpop.f32.mrb[5].mxu0 }
 0x107   : > { %v664_v49 = vpop.f32.mrb[5].mxu1  ;;  %v454_v50 = vpop.f32.mrb[6].mxu0 }
 0x108   : > { %v517_v51 = vmax.f32 %v457_v46, %v511_v47  ;;  %v514_v52 = vpop.f32.mrb[6].mxu1  ;;  %v657_v53 = vpop.f32.mrb[7].mxu0 }
 0x109   : > { %v665_v54 = vpop.f32.mrb[7].mxu1 }
 0x10a   : > { %v524_v55 = vadd.f32 %v522_v45, %v517_v51 }
 0x10c   : > { %v525_v56 = vmax.f32 %v524_v55, 0.0 }
 0x10e   : > { %v526_v57 = vpack.c.bf16 %v525_v56, %v525_v56 }
 0x110   : > { %527 = vst [vmem:[%s269_s10] sm:$0x7] %v526_v57 }
 0x111 PF: > { %p10_p9 = scmp.ge.s32.totalorder %s768_s16, 9   ;;  %s841_s12 = smov %s721_s13 }
 0x112   : > { %s842_s13 = smov %s777_s19  ;;  %s843_s14 = smov %s768_s16 }
 0x113   :  { %12 = sbr.rel (!%p10_p9) target bundleno = 2 (0x2), region = 111 }

// kernel: lenet5_forward.4
= control target key start
LH: loop header
LB: loop body
LE: loop exit
PB: predicated region body
PF: predicated region fallthrough
CT: control target
= control target key end

     0   :  { %v707_v0 = vmov 0   ;;  %vm102_vm0 = vcmask 179200   ;;  %vm106_vm1 = vcmask 1042432   ;;  %s918_s0 = inlined_call_operand.vmem [shape: bf16[4,150,128], index: 0, kind: input, shape index: {}]   ;;  %s919_s1 = inlined_call_operand.vmem [shape: bf16[16,150], index: 1, kind: input, shape index: {}]   ;;  %s920_s2 = inlined_call_operand.vmem [shape: f32[16,1], index: 2, kind: input, shape index: {}]   ;;  %s921_s3 = inlined_call_operand.vmem [shape: bf16[16,128], index: 3, kind: output, shape index: {}]  }
   0x1   :  { %110 = vmatprep.subr.bf16.mxu0 %v707_v0  ;;  %231 = vmatprep.subr.bf16.mxu1 %v707_v0  ;;  %v664_v1 = vld [vmem:[%s918_s0] sm:$0xff]   ;;  %v665_v2 = vld [vmem:[%s918_s0 + $0x4c] sm:$0xff]   ;;  %v667_v4 = vld [vmem:[%s918_s0 + $0x54] sm:$0xff]  }
   0x2   :  { %663 = vset.pattern.permute.xlu0 %v707_v0  ;;  %111 = vmatpush1.bf16.msra.mxu0 %v664_v1  ;;  %v666_v3 = vld [vmem:[%s918_s0 + $0x8] sm:$0xff]   ;;  %v668_v5 = vld [vmem:[%s918_s0 + $0x10] sm:$0xff]   ;;  %v669_v6 = vld [vmem:[%s918_s0 + $0x5c] sm:$0xff]  }
   0x3   :  { %232 = vmatpush1.bf16.msra.mxu1 %v665_v2  ;;  %112 = vmatprep.subr.bf16.mxu0 %v707_v0  ;;  %v670_v7 = vld [vmem:[%s918_s0 + $0x18] sm:$0xff]   ;;  %v671_v8 = vld [vmem:[%s918_s0 + $0x64] sm:$0xff]   ;;  %v673_v10 = vld [vmem:[%s918_s0 + $0x6c] sm:$0xff]  }
   0x4   :  { %233 = vmatprep.subr.bf16.mxu1 %v707_v0  ;;  %v672_v9 = vld [vmem:[%s918_s0 + $0x20] sm:$0xff]   ;;  %v674_v11 = vld [vmem:[%s918_s0 + $0x28] sm:$0xff]   ;;  %v675_v12 = vld [vmem:[%s918_s0 + $0x74] sm:$0xff]  }
   0x5   :  { %v684_v13 = vld [vmem:[%s919_s1 + $0x4] ss:$8 sps:$4 sm:$0xff]   ;;  %v676_v14 = vld [vmem:[%s918_s0 + $0x30] sm:$0xff]   ;;  %v677_v15 = vld [vmem:[%s918_s0 + $0x7c] sm:$0xff]  }
   0x6   :  { %113 = vmatpush1.bf16.msra.mxu0 %v666_v3  ;;  %562 = vmatprep.mubr.msk.bf16.mxu0 %vm102_vm0, %v684_v13  ;;  %v678_v16 = vld [vmem:[%s918_s0 + $0x38] sm:$0xff]   ;;  %v679_v17 = vld [vmem:[%s918_s0 + $0x84] sm:$0xff]   ;;  %v683_v20 = vld [vmem:[%s918_s0 + $0x94] ss:$0 sps:$4 sm:$0x77]  }
   0x7   :  { %234 = vmatpush1.bf16.msra.mxu1 %v667_v4  ;;  %114 = vmatprep.subr.bf16.mxu0 %v707_v0  ;;  %v682_v18 = vld [vmem:[%s918_s0 + $0x48] ss:$0 sps:$4 sm:$0x77]   ;;  %v680_v19 = vld [vmem:[%s918_s0 + $0x40] sm:$0xff]   ;;  %v681_v21 = vld [vmem:[%s918_s0 + $0x8c] sm:$0xff]   ;;  %v229_v23 = vsel %vm106_vm1, %v683_v20, 0 }
   0x8   :  { %235 = vmatprep.subr.bf16.mxu1 %v707_v0  ;;  %592 = vmatprep.mubr.msk.bf16.mxu1 %vm102_vm0, %v684_v13  ;;  %v108_v22 = vsel %vm106_vm1, %v682_v18, 0  ;;  %v819_v24 = vld [vmem:[%s919_s1] ss:$8 sps:$4 sm:$0xff]   ;;  %v687_v25 = vld [vmem:[%s918_s0 + $0x98] sm:$0xff]   ;;  %v690_v30 = vld [vmem:[%s918_s0 + $0xec] sm:$0xff]  }
   0x9   :  { %v688_v26 = vld [vmem:[%s918_s0 + $0xe4] sm:$0xff]   ;;  %v692_v32 = vld [vmem:[%s918_s0 + $0xf4] sm:$0xff]   ;;  %v694_v34 = vld [vmem:[%s918_s0 + $0xfc] sm:$0xff]  }
   0xa   :  { %115 = vmatpush1.bf16.msra.mxu0 %v668_v5  ;;  %v520_v27 = vld [vmem:[%s920_s2] sm:$0xff]  ;;  %v521_v29 = vld [vmem:[%s920_s2 + $0x8] sm:$0xff]  ;;  %v693_v33 = vld [vmem:[%s918_s0 + $0xb0] sm:$0xff]  }
   0xb   :  { %236 = vmatpush1.bf16.msra.mxu1 %v669_v6  ;;  %116 = vmatprep.subr.bf16.mxu0 %v707_v0  ;;  %v689_v28 = vld [vmem:[%s918_s0 + $0xa0] sm:$0xff]   ;;  %v691_v31 = vld [vmem:[%s918_s0 + $0xa8] sm:$0xff]   ;;  %v695_v35 = vld [vmem:[%s918_s0 + $0xb8] sm:$0xff]  }
   0xc   :  { %237 = vmatprep.subr.bf16.mxu1 %v707_v0  ;;  %524 = vperm.xlu0 %663, %v520_v27   ;;  %v696_v36 = vld [vmem:[%s918_s0 + $0x104] sm:$0xff]   ;;  %v698_v38 = vld [vmem:[%s918_s0 + $0x10c] sm:$0xff]   ;;  %v700_v40 = vld [vmem:[%s918_s0 + $0x114] sm:$0xff]  }
   0xd   :  { %v697_v37 = vld [vmem:[%s918_s0 + $0xc0] sm:$0xff]   ;;  %v699_v39 = vld [vmem:[%s918_s0 + $0xc8] sm:$0xff]   ;;  %v701_v41 = vld [vmem:[%s918_s0 + $0xd0] sm:$0xff]  }
   0xe   :  { %117 = vmatpush1.bf16.msra.mxu0 %v670_v7  ;;  %v702_v42 = vld [vmem:[%s918_s0 + $0x11c] sm:$0xff]   ;;  %v704_v44 = vld [vmem:[%s918_s0 + $0x124] sm:$0xff]   ;;  %v706_v46 = vld [vmem:[%s918_s0 + $0x12c] ss:$0 sps:$4 sm:$0x77]  }
   0xf   :  { %238 = vmatpush1.bf16.msra.mxu1 %v671_v8  ;;  %118 = vmatprep.subr.bf16.mxu0 %v707_v0  ;;  %v703_v43 = vld [vmem:[%s918_s0 + $0xd8] sm:$0xff]   ;;  %v705_v45 = vld [vmem:[%s918_s0 + $0xe0] ss:$0 sps:$4 sm:$0x77]   ;;  %v475_v48 = vsel %vm106_vm1, %v706_v46, 0 }
  0x10   :  { %239 = vmatprep.subr.bf16.mxu1 %v707_v0  ;;  %529 = vperm.xlu0 %663, %v521_v29   ;;  %v352_v47 = vsel %vm106_vm1, %v705_v45, 0 }
  0x12   :  { %119 = vmatpush1.bf16.msra.mxu0 %v672_v9 }
  0x13   :  { %240 = vmatpush1.bf16.msra.mxu1 %v673_v10  ;;  %120 = vmatprep.subr.bf16.mxu0 %v707_v0 }
  0x14   :  { %241 = vmatprep.subr.bf16.mxu1 %v707_v0 }
  0x16   :  { %121 = vmatpush1.bf16.msra.mxu0 %v674_v11 }
  0x17   :  { %242 = vmatpush1.bf16.msra.mxu1 %v675_v12  ;;  %122 = vmatprep.subr.bf16.mxu0 %v707_v0 }
  0x18   :  { %243 = vmatprep.subr.bf16.mxu1 %v707_v0 }
  0x1a   :  { %123 = vmatpush1.bf16.msra.mxu0 %v676_v14 }
  0x1b   :  { %244 = vmatpush1.bf16.msra.mxu1 %v677_v15  ;;  %124 = vmatprep.subr.bf16.mxu0 %v707_v0 }
  0x1c   :  { %245 = vmatprep.subr.bf16.mxu1 %v707_v0 }
  0x1e   :  { %125 = vmatpush1.bf16.msra.mxu0 %v678_v16 }
  0x1f   :  { %246 = vmatpush1.bf16.msra.mxu1 %v679_v17  ;;  %126 = vmatprep.subr.bf16.mxu0 %v707_v0 }
  0x20   :  { %247 = vmatprep.subr.bf16.mxu1 %v707_v0 }
  0x22   :  { %127 = vmatpush1.bf16.msra.mxu0 %v680_v19 }
  0x23   :  { %248 = vmatpush1.bf16.msra.mxu1 %v681_v21  ;;  %128 = vmatprep.subr.bf16.mxu0 %v707_v0 }
  0x24   :  { %249 = vmatprep.subr.bf16.mxu1 %v707_v0 }
  0x26   :  { %129 = vmatpush1.bf16.msra.mxu0 %v108_v22 }
  0x27   :  { %250 = vmatpush1.bf16.msra.mxu1 %v229_v23  ;;  %354 = vmatprep.subr.bf16.mxu0 %v707_v0 }
  0x28   :  { %477 = vmatprep.subr.bf16.mxu1 %v707_v0 }
  0x29   :  { %143 = vmatmul.mubr.bf16.vlgmr.msra.gmra.mrb[0].mxu0 %v819_v24 }
  0x2a   :  { %264 = vmatmul.mubr.bf16.vlgmr.msra.gmra.mrb[0].mxu1 %v819_v24  ;;  %355 = vmatpush1.bf16.msra.mxu0 %v687_v25 }
  0x2b   :  { %478 = vmatpush1.bf16.msra.mxu1 %v688_v26  ;;  %356 = vmatprep.subr.bf16.mxu0 %v707_v0 }
  0x2c   :  { %479 = vmatprep.subr.bf16.mxu1 %v707_v0  ;;  %622 = vmatprep.mubr.msk.bf16.mxu0 %vm102_vm0, %v684_v13 }
  0x2d   :  { %652 = vmatprep.mubr.msk.bf16.mxu1 %vm102_vm0, %v684_v13 }
  0x2e   :  { %357 = vmatpush1.bf16.msra.mxu0 %v689_v28 }
  0x2f   :  { %480 = vmatpush1.bf16.msra.mxu1 %v690_v30  ;;  %358 = vmatprep.subr.bf16.mxu0 %v707_v0 }
  0x30   :  { %481 = vmatprep.subr.bf16.mxu1 %v707_v0 }
  0x32   :  { %359 = vmatpush1.bf16.msra.mxu0 %v691_v31 }
  0x33   :  { %482 = vmatpush1.bf16.msra.mxu1 %v692_v32  ;;  %360 = vmatprep.subr.bf16.mxu0 %v707_v0 }
  0x34   :  { %483 = vmatprep.subr.bf16.mxu1 %v707_v0 }
  0x36   :  { %361 = vmatpush1.bf16.msra.mxu0 %v693_v33 }
  0x37   :  { %484 = vmatpush1.bf16.msra.mxu1 %v694_v34  ;;  %362 = vmatprep.subr.bf16.mxu0 %v707_v0 }
  0x38   :  { %485 = vmatprep.subr.bf16.mxu1 %v707_v0 }
  0x3a   :  { %363 = vmatpush1.bf16.msra.mxu0 %v695_v35 }
  0x3b   :  { %486 = vmatpush1.bf16.msra.mxu1 %v696_v36  ;;  %364 = vmatprep.subr.bf16.mxu0 %v707_v0 }
  0x3c   :  { %487 = vmatprep.subr.bf16.mxu1 %v707_v0 }
  0x3e   :  { %365 = vmatpush1.bf16.msra.mxu0 %v697_v37 }
  0x3f   :  { %488 = vmatpush1.bf16.msra.mxu1 %v698_v38  ;;  %366 = vmatprep.subr.bf16.mxu0 %v707_v0 }
  0x40   :  { %489 = vmatprep.subr.bf16.mxu1 %v707_v0 }
  0x42   :  { %367 = vmatpush1.bf16.msra.mxu0 %v699_v39 }
  0x43   :  { %490 = vmatpush1.bf16.msra.mxu1 %v700_v40  ;;  %368 = vmatprep.subr.bf16.mxu0 %v707_v0 }
  0x44   :  { %491 = vmatprep.subr.bf16.mxu1 %v707_v0 }
  0x46   :  { %369 = vmatpush1.bf16.msra.mxu0 %v701_v41 }
  0x47   :  { %492 = vmatpush1.bf16.msra.mxu1 %v702_v42  ;;  %370 = vmatprep.subr.bf16.mxu0 %v707_v0 }
  0x48   :  { %493 = vmatprep.subr.bf16.mxu1 %v707_v0 }
  0x4a   :  { %371 = vmatpush1.bf16.msra.mxu0 %v703_v43 }
  0x4b   :  { %494 = vmatpush1.bf16.msra.mxu1 %v704_v44  ;;  %372 = vmatprep.subr.bf16.mxu0 %v707_v0 }
  0x4c   :  { %495 = vmatprep.subr.bf16.mxu1 %v707_v0 }
  0x4e   :  { %373 = vmatpush1.bf16.msra.mxu0 %v352_v47 }
  0x4f   :  { %496 = vmatpush1.bf16.msra.mxu1 %v475_v48 }
  0x51   :  { %387 = vmatmul.mubr.bf16.vlgmr.msra.gmra.mrb[4].mxu0 %v819_v24 }
  0x52   :  { %510 = vmatmul.mubr.bf16.vlgmr.msra.gmra.mrb[4].mxu1 %v819_v24 }
  0x8b   :  { %v525_v59 = vpop.permute.xlu0 %524 }
  0x8f   :  { %v530_v9 = vpop.permute.xlu0 %529 }
  0xfc   :  { %v144_v49 = vpop.f32.mrb[0].mxu0 }
  0xfd   :  { %v265_v50 = vpop.f32.mrb[0].mxu1  ;;  %v146_v51 = vpop.f32.mrb[1].mxu0 }
  0xfe   :  { %v272_v52 = vmax.f32 %v144_v49, %v265_v50  ;;  %v267_v53 = vpop.f32.mrb[1].mxu1  ;;  %v147_v54 = vpop.f32.mrb[2].mxu0 }
  0xff   :  { %v268_v55 = vpop.f32.mrb[2].mxu1  ;;  %v149_v56 = vpop.f32.mrb[3].mxu0 }
 0x100   :  { %v273_v57 = vmax.f32 %v147_v54, %v268_v55  ;;  %v270_v58 = vpop.f32.mrb[3].mxu1 }
 0x124   :  { %v388_v60 = vpop.f32.mrb[4].mxu0 }
 0x125   :  { %v395_v61 = vmax.f32 %v272_v52, %v388_v60  ;;  %v511_v62 = vpop.f32.mrb[4].mxu1  ;;  %v390_v63 = vpop.f32.mrb[5].mxu0 }
 0x126   :  { %v513_v0 = vpop.f32.mrb[5].mxu1  ;;  %v391_v1 = vpop.f32.mrb[6].mxu0 }
 0x127   :  { %v518_v2 = vmax.f32 %v395_v61, %v511_v62  ;;  %v396_v3 = vmax.f32 %v273_v57, %v391_v1  ;;  %v514_v4 = vpop.f32.mrb[6].mxu1  ;;  %v393_v5 = vpop.f32.mrb[7].mxu0 }
 0x128   :  { %v516_v6 = vpop.f32.mrb[7].mxu1 }
 0x129   :  { %v532_v7 = vadd.f32 %v525_v59, %v518_v2  ;;  %v519_v8 = vmax.f32 %v396_v3, %v514_v4 }
 0x12b   :  { %v533_v10 = vadd.f32 %v530_v9, %v519_v8  ;;  %v534_v11 = vmax.f32 %v532_v7, 0.0 }
 0x12d   :  { %v535_v12 = vmax.f32 %v533_v10, 0.0 }
 0x12f   :  { %v660_v13 = vpack.c.bf16 %v535_v12, %v534_v11 }
 0x131   :  { %661 = vst [vmem:[%s921_s3] sm:$0xff] %v660_v13  }

// kernel: lenet5_forward.5
= control target key start
LH: loop header
LB: loop body
LE: loop exit
PB: predicated region body
PF: predicated region fallthrough
CT: control target
= control target key end

     0   :  { %v741_v0 = vmov 0   ;;  %vm249_vm0 = vcmask 130048   ;;  %v742_v32 = vmov 0.0   ;;  %vm406_vm1 = vcmask 1043456   ;;  %s947_s1 = inlined_call_operand.vmem [shape: bf16[400,120], index: 1, kind: input, shape index: {}]   ;;  %s948_s0 = inlined_call_operand.vmem [shape: bf16[8,400], index: 0, kind: input, shape index: {}]   ;;  %s949_s3 = inlined_call_operand.vmem [shape: bf16[120,84], index: 3, kind: input, shape index: {}]   ;;  %s950_s5 = inlined_call_operand.vmem [shape: bf16[84,10], index: 5, kind: input, shape index: {}]   ;;  %s951_s2 = inlined_call_operand.vmem [shape: f32[1,120], index: 2, kind: input, shape index: {}]   ;;  %s952_s4 = inlined_call_operand.vmem [shape: f32[1,84], index: 4, kind: input, shape index: {}]   ;;  %s953_s6 = inlined_call_operand.vmem [shape: f32[1,10], index: 6, kind: input, shape index: {}]   ;;  %s954_s7 = inlined_call_operand.vmem [shape: f32[8,10], index: 7, kind: output, shape index: {}]  }
   0x1   :  { %293 = vmatprep.subr.bf16.mxu1 %v741_v0  ;;  %v694_v1 = vld [vmem:[%s947_s1 + $0x40] sm:$0xff]   ;;  %v697_v4 = vld [vmem:[%s947_s1 + $0x48] sm:$0xff]   ;;  %v700_v7 = vld [vmem:[%s947_s1 + $0x50] sm:$0xff]   ;;  %vm743_vm2 = vmmov 0   ;;  %vm402_vm3 = vcmask 982016   ;;  %vm507_vm4 = vcmask 1041408  }
   0x2   :  { %v695_v2 = vld [vmem:[%s947_s1 + $0x80] sm:$0xff]   ;;  %617 = vmatprep.subr.bf16.mxu0 %v694_v1  ;;  %v698_v5 = vld [vmem:[%s947_s1 + $0x88] sm:$0xff]   ;;  %v701_v8 = vld [vmem:[%s947_s1 + $0x90] sm:$0xff]   ;;  %vm503_vm5 = vcmask 687104   ;;  %vm551_vm6 = vcmask 80896  }
   0x3   :  { %v696_v3 = vld [vmem:[%s947_s1] sm:$0xff]   ;;  %294 = vmatpush1.bf16.msra.mxu1 %v695_v2  ;;  %v699_v6 = vld [vmem:[%s947_s1 + $0x8] sm:$0xff]   ;;  %v702_v9 = vld [vmem:[%s947_s1 + $0x10] sm:$0xff]  }
   0x4   :  { %618 = vmatpush3.bf16.msra.mxu0 %v696_v3  ;;  %295 = vmatprep.subr.bf16.mxu1 %v741_v0  ;;  %v703_v10 = vld [vmem:[%s947_s1 + $0x58] sm:$0xff]   ;;  %v706_v13 = vld [vmem:[%s947_s1 + $0x60] sm:$0xff]   ;;  %v709_v16 = vld [vmem:[%s947_s1 + $0x68] sm:$0xff]  }
   0x5   :  { %619 = vmatprep.subr.bf16.mxu0 %v697_v4  ;;  %v704_v11 = vld [vmem:[%s947_s1 + $0x98] sm:$0xff]   ;;  %v707_v14 = vld [vmem:[%s947_s1 + $0xa0] sm:$0xff]   ;;  %v710_v17 = vld [vmem:[%s947_s1 + $0xa8] sm:$0xff]  }
   0x6   :  { %v705_v12 = vld [vmem:[%s947_s1 + $0x18] sm:$0xff]   ;;  %v708_v15 = vld [vmem:[%s947_s1 + $0x20] sm:$0xff]   ;;  %v711_v18 = vld [vmem:[%s947_s1 + $0x28] sm:$0xff]  }
   0x7   :  { %296 = vmatpush1.bf16.msra.mxu1 %v698_v5  ;;  %v712_v19 = vld [vmem:[%s947_s1 + $0x70] sm:$0xff]   ;;  %v27_v22 = vld [vmem:[%s948_s0] sm:$0xff]  ;;  %v715_v23 = vld [vmem:[%s947_s1 + $0x78] sm:$0xff]  }
   0x8   :  { %620 = vmatpush3.bf16.msra.mxu0 %v699_v6  ;;  %297 = vmatprep.subr.bf16.mxu1 %v741_v0  ;;  %v713_v20 = vld [vmem:[%s947_s1 + $0xb0] sm:$0xff]   ;;  %v570_v24 = vcombine.high %v27_v22, %v27_v22  ;;  %v28_v25 = vld [vmem:[%s948_s0 + $0x8] sm:$0xff]  ;;  %v716_v27 = vld [vmem:[%s947_s1 + $0xb8] sm:$0xff]   ;;  %v569_v30 = vcombine.low %v27_v22, %v27_v22 }
   0x9   :  { %621 = vmatprep.subr.bf16.mxu0 %v700_v7  ;;  %v714_v21 = vld [vmem:[%s947_s1 + $0x30] sm:$0xff]   ;;  %v572_v26 = vcombine.high %v28_v25, %v28_v25  ;;  %v717_v28 = vld [vmem:[%s947_s1 + $0x38] sm:$0xff]   ;;  %v720_v29 = vld [vmem:[%s947_s1 + $0xc0] sm:$0xff]   ;;  %v571_v33 = vcombine.low %v28_v25, %v28_v25 }
   0xa   :  { %285 = vmatprep.mubr.bf16.mxu0 %v570_v24  ;;  %v723_v31 = vld [vmem:[%s949_s3] sm:$0xff]   ;;  %v724_v34 = vld [vmem:[%s949_s3 + $0x8] sm:$0xff]   ;;  %v725_v35 = vld [vmem:[%s949_s3 + $0x10] sm:$0xff]  }
   0xb   :  { %298 = vmatpush1.bf16.msra.mxu1 %v701_v8  ;;  %598 = vmatprep.mubr.msk.bf16.mxu1 %vm249_vm0, %v572_v26  ;;  %v726_v36 = vld [vmem:[%s949_s3 + $0x18] sm:$0xff]   ;;  %v727_v37 = vld [vmem:[%s949_s3 + $0x20] sm:$0xff]   ;;  %v728_v38 = vld [vmem:[%s949_s3 + $0x28] sm:$0xff]  }
   0xc   :  { %622 = vmatpush3.bf16.msra.mxu0 %v702_v9  ;;  %299 = vmatprep.subr.bf16.mxu1 %v741_v0  ;;  %v729_v39 = vld [vmem:[%s949_s3 + $0x30] sm:$0xff]   ;;  %v730_v40 = vld [vmem:[%s949_s3 + $0x38] ss:$0 sps:$4 sm:$0xff]   ;;  %v731_v42 = vld [vmem:[%s950_s5] sm:$0xff]  }
   0xd   :  { %623 = vmatprep.subr.bf16.mxu0 %v703_v10  ;;  %v408_v41 = vsel %vm406_vm1, %v730_v40, 0  ;;  %v732_v43 = vld [vmem:[%s950_s5 + $0x8] sm:$0xff]   ;;  %v733_v44 = vld [vmem:[%s950_s5 + $0x10] sm:$0xff]   ;;  %v734_v45 = vld [vmem:[%s950_s5 + $0x18] sm:$0xff]  }
   0xe   :  { %v568_v48 = vld [vmem:[%s951_s2] ss:$0 sm:$0xff]  ;;  %v736_v61 = vld [vmem:[%s950_s5 + $0x28] ss:$0 sps:$4 sm:$0x33]  }
   0xf   :  { %300 = vmatpush1.bf16.msra.mxu1 %v704_v11  ;;  %v735_v60 = vld [vmem:[%s950_s5 + $0x20] sm:$0xff]   ;;  %v509_v62 = vsel %vm507_vm4, %v736_v61, 0 }
  0x10   :  { %624 = vmatpush3.bf16.msra.mxu0 %v705_v12  ;;  %301 = vmatprep.subr.bf16.mxu1 %v741_v0  ;;  %v599_v63 = vld [vmem:[%s952_s4] ss:$0 sm:$0xff] }
  0x11   :  { %625 = vmatprep.subr.bf16.mxu0 %v706_v13  ;;  %v609_v7 = vld [vmem:[%s953_s6] ss:$0 sm:$0xff] }
  0x13   :  { %302 = vmatpush1.bf16.msra.mxu1 %v707_v14 }
  0x14   :  { %626 = vmatpush3.bf16.msra.mxu0 %v708_v15  ;;  %303 = vmatprep.subr.bf16.mxu1 %v741_v0 }
  0x15   :  { %627 = vmatprep.subr.bf16.mxu0 %v709_v16 }
  0x17   :  { %304 = vmatpush1.bf16.msra.mxu1 %v710_v17 }
  0x18   :  { %628 = vmatpush3.bf16.msra.mxu0 %v711_v18  ;;  %305 = vmatprep.subr.bf16.mxu1 %v741_v0 }
  0x19   :  { %629 = vmatprep.subr.bf16.mxu0 %v712_v19 }
  0x1b   :  { %306 = vmatpush1.bf16.msra.mxu1 %v713_v20 }
  0x1c   :  { %630 = vmatpush3.bf16.msra.mxu0 %v714_v21  ;;  %307 = vmatprep.subr.bf16.mxu1 %v741_v0 }
  0x1d   :  { %631 = vmatprep.subr.bf16.mxu0 %v715_v23 }
  0x1f   :  { %308 = vmatpush1.bf16.msra.mxu1 %v716_v27 }
  0x20   :  { %632 = vmatpush3.bf16.msra.mxu0 %v717_v28  ;;  %309 = vmatprep.subr.bf16.mxu1 %v741_v0 }
  0x21   :  { %655 = vmatprep.subr.bf16.mxu0 %v742_v32 }
  0x23   :  { %286 = vmatmul.mubr.bf16.vlgmr.msra.gmra.mrb[0].mxu0 %v569_v30  ;;  %310 = vmatpush1.bf16.msra.mxu1 %v720_v29 }
  0x24   :  { %656 = vmatpush3.bf16.msra.mxu0 %v723_v31  ;;  %675 = vmatprep.subr.bf16.mxu1 %v742_v32 }
  0x25   :  { %657 = vmatprep.subr.bf16.mxu0 %v742_v32  ;;  %671 = vmatprep.mubr.msk.bf16.mxu0 %vm743_vm2, %v742_v32 }
  0x26   :  { %326 = vmatmul.mubr.bf16.vlgmr.msra.gmra.mrb[0].mxu1 %v571_v33 }
  0x27   :  { %687 = vmatprep.mubr.msk.bf16.mxu1 %vm743_vm2, %v742_v32  ;;  %676 = vmatpush3.bf16.msra.mxu1 %v731_v42 }
  0x28   :  { %658 = vmatpush3.bf16.msra.mxu0 %v724_v34  ;;  %677 = vmatprep.subr.bf16.mxu1 %v742_v32 }
  0x29   :  { %659 = vmatprep.subr.bf16.mxu0 %v742_v32 }
  0x2b   :  { %678 = vmatpush3.bf16.msra.mxu1 %v732_v43 }
  0x2c   :  { %660 = vmatpush3.bf16.msra.mxu0 %v725_v35  ;;  %679 = vmatprep.subr.bf16.mxu1 %v742_v32 }
  0x2d   :  { %661 = vmatprep.subr.bf16.mxu0 %v742_v32 }
  0x2f   :  { %680 = vmatpush3.bf16.msra.mxu1 %v733_v44 }
  0x30   :  { %662 = vmatpush3.bf16.msra.mxu0 %v726_v36  ;;  %681 = vmatprep.subr.bf16.mxu1 %v742_v32 }
  0x31   :  { %663 = vmatprep.subr.bf16.mxu0 %v742_v32 }
  0x33   :  { %682 = vmatpush3.bf16.msra.mxu1 %v734_v45 }
  0x34   :  { %664 = vmatpush3.bf16.msra.mxu0 %v727_v37  ;;  %683 = vmatprep.subr.bf16.mxu1 %v742_v32 }
  0x35   :  { %665 = vmatprep.subr.bf16.mxu0 %v742_v32 }
  0x37   :  { %684 = vmatpush3.bf16.msra.mxu1 %v735_v60 }
  0x38   :  { %666 = vmatpush3.bf16.msra.mxu0 %v728_v38  ;;  %685 = vmatprep.subr.bf16.mxu1 %v742_v32 }
  0x39   :  { %667 = vmatprep.subr.bf16.mxu0 %v742_v32 }
  0x3b   :  { %686 = vmatpush3.bf16.msra.mxu1 %v509_v62 }
  0x3c   :  { %668 = vmatpush3.bf16.msra.mxu0 %v729_v39 }
  0x3d   :  { %669 = vmatprep.subr.bf16.mxu0 %v742_v32 }
  0x40   :  { %670 = vmatpush3.bf16.msra.mxu0 %v408_v41 }
  0xf6   :  { %v633_v46 = vpop.f32.mrb[0].mxu0 }
  0xf7   :  { %v634_v47 = vpop.f32.mrb[1].mxu0 }
  0xf8   :  { %v635_v49 = vadd.f32 %v634_v47, %v633_v46  ;;  %v636_v50 = vpop.f32.mrb[2].mxu0 }
  0xf9   :  { %v637_v51 = vpop.f32.mrb[3].mxu0  ;;  %v327_v52 = vpop.f32.mrb[0].mxu1 }
  0xfa   :  { %v288_v53 = vadd.f32 %v635_v49, %v568_v48  ;;  %v329_v54 = vpop.f32.mrb[1].mxu1 }
  0xfb   :  { %v330_v55 = vpop.f32.mrb[2].mxu1 }
  0xfc   :  { %v328_v56 = vadd.f32 %v327_v52, %v288_v53  ;;  %v331_v57 = vpop.f32.mrb[3].mxu1 }
  0xfe   :  { %v333_v58 = vmax.f32 %v328_v56, 0.0 }
 0x100   :  { %v334_v59 = vpack.c.bf16 %v333_v58, %v333_v58 }
 0x102   :  { %672 = vmatmul.mubr.msk.bf16.vlgmr.msra.gmra.mrb[4].mxu0 %vm402_vm3, %v334_v59 }
 0x1d5   :  { %v444_v0 = vpop.f32.mrb[4].mxu0 }
 0x1d6   :  { %v445_v1 = vadd.f32 %v599_v63, %v444_v0  ;;  %v673_v2 = vpop.f32.mrb[5].mxu0 }
 0x1d7   :  { %v447_v3 = vpop.f32.mrb[6].mxu0 }
 0x1d8   :  { %v450_v4 = vmax.f32 %v445_v1, 0.0  ;;  %v674_v5 = vpop.f32.mrb[7].mxu0 }
 0x1da   :  { %v451_v6 = vpack.c.bf16 %v450_v4, %v450_v4 }
 0x1dc   :  { %688 = vmatmul.mubr.msk.bf16.vlgmr.msra.gmra.mrb[4].mxu1 %vm503_vm5, %v451_v6 }
 0x2af   :  { %v545_v8 = vpop.f32.mrb[4].mxu1 }
 0x2b0   :  { %v546_v9 = vadd.f32 %v609_v7, %v545_v8  ;;  %v689_v10 = vpop.f32.mrb[5].mxu1 }
 0x2b1   :  { %v548_v11 = vpop.f32.mrb[6].mxu1 }
 0x2b2   :  { %v690_v12 = vpop.f32.mrb[7].mxu1  ;;  %v552_v13 = vsel %vm551_vm6, %v546_v9, -inf }
 0x2b3   :  { %553 = vmax.xlane.f32.xlu0 %v552_v13 }
 0x340   :  { %v554_v14 = vpop.xlane.xlu0 %553 }
 0x341   :  { %v555_v15 = vsub.f32 %v546_v9, %v554_v14 }
 0x343   :  { %v556_v16 = vmul.f32 1.442695, %v555_v15 }
 0x345   :  { %737 = vpow2.f32 %v556_v16 }
 0x34f   :  { %v738_v17 = vpop.eup %737 }
 0x350   :  { %v558_v18 = vsel %vm551_vm6, %v738_v17, 0.0 }
 0x351   :  { %559 = vadd.xlane.f32.xlu0 %v558_v18 }
 0x3de   :  { %v560_v19 = vpop.xlane.xlu0 %559 }
 0x3df   :  { %739 = vrcp.f32 %v560_v19 }
 0x3e9   :  { %v740_v20 = vpop.eup %739 }
 0x3ea   :  { %v562_v21 = vmul.f32 %v740_v20, %v738_v17 }
 0x3ec   :  { %563 = vst.msk [vmem:[%s954_s7] sm:$0xff] %vm551_vm6, %v562_v21 }

</bundles_post_ra>
